<compile_context>
chip_gen: v5e
topology: v5e:2x2
jax: 0.10.0
libtpu: 0.0.40
codegen_flags: <defaults>
</compile_context>

<pallas_src>
import jax
import jax.numpy as jnp
from jax.experimental import pallas as pl
from jax.experimental.pallas import tpu as pltpu

_LANE_WIDTH = 1024   # lane-dense last dim: 8 * 128 lanes, unmasked vld/vst
_ROW_TILE = 512      # 512 rows * 1024 lanes * 4 B = 2 MiB f32 per block


def _arelu_kernel(alpha_ref, beta_ref, x_ref, o_ref):
    # alpha / beta are precomputed scalars living in SMEM.
    alpha = alpha_ref[0]
    beta = beta_ref[0]
    x = x_ref[...].astype(jnp.float32)           # upcast per-tile (bf16-safe)
    o_ref[...] = (x * jnp.where(x > 0.0, beta, alpha)).astype(o_ref.dtype)


def arelu(x, alphap, betap):
    """AReLU forward. x: any shape float. alphap/betap: shape (1,) params."""
    orig_shape = x.shape
    dtype = x.dtype

    # Scalar parameter prep done once in plain JAX (not per grid step).
    alpha = jnp.clip(alphap.astype(jnp.float32), 0.01, 0.99).reshape((1,))
    beta = (1.0 + jax.nn.sigmoid(betap.astype(jnp.float32))).reshape((1,))

    flat = x.reshape(-1)
    n = flat.shape[0]

    # Minimal tail pad so the flat array reshapes into a (rows, 1024) slab.
    # When n is already a multiple of 1024 (the common case) this is a no-op,
    # so no extra full-array HBM copy is introduced.
    n_pad = ((n + _LANE_WIDTH - 1) // _LANE_WIDTH) * _LANE_WIDTH
    if n_pad != n:
        flat = jnp.pad(flat, (0, n_pad - n))
    rows = n_pad // _LANE_WIDTH
    x2d = flat.reshape(rows, _LANE_WIDTH)

    # Big blocks; if the whole slab is smaller than one tile, use the full
    # extent (always a legal block shape).
    block_rows = rows if rows < _ROW_TILE else _ROW_TILE
    grid = (pl.cdiv(rows, block_rows),)

    dtype_bytes = jnp.dtype(dtype).itemsize
    cost = pl.CostEstimate(
        flops=3 * n,
        transcendentals=0,
        bytes_accessed=2 * n * dtype_bytes,
    )

    out2d = pl.pallas_call(
        _arelu_kernel,
        out_shape=jax.ShapeDtypeStruct((rows, _LANE_WIDTH), dtype),
        grid=grid,
        in_specs=[
            pl.BlockSpec(memory_space=pltpu.SMEM),   # alpha scalar
            pl.BlockSpec(memory_space=pltpu.SMEM),   # beta scalar
            pl.BlockSpec((block_rows, _LANE_WIDTH), lambda i: (i, 0)),
        ],
        out_specs=pl.BlockSpec((block_rows, _LANE_WIDTH), lambda i: (i, 0)),
        compiler_params=pltpu.CompilerParams(
            dimension_semantics=("parallel",),
        ),
        cost_estimate=cost,
    )(alpha, beta, x2d)

    out = out2d.reshape(-1)
    if n_pad != n:
        out = out[:n]
    return out.reshape(orig_shape)


def arelu_reference(x, alphap, betap):
    alpha = jnp.clip(alphap, 0.01, 0.99)
    beta = 1.0 + jax.nn.sigmoid(betap)
    return jnp.maximum(x, 0.0) * beta - jnp.maximum(-x, 0.0) * alpha


if __name__ == "__main__":
    key = jax.random.PRNGKey(0)

    # NCHW input, small shape (matches the elementwise forward of the module).
    x = jax.random.normal(key, (2, 4, 16, 16), dtype=jnp.float32)

    # deterministic parameter init matching AReLU.__init__(alpha=0.9, beta=2.0)
    alphap = jnp.array([0.9], dtype=jnp.float32)
    betap = jnp.array([2.0], dtype=jnp.float32)

    out = arelu(x, alphap, betap)
    out = jax.block_until_ready(out)

    ref = arelu_reference(x, alphap, betap)
    assert out.shape == x.shape and out.dtype == x.dtype
    assert jnp.allclose(out, ref, atol=1e-6, rtol=1e-6)

    # also exercise the ragged-tail (padded) path once
    x2 = jax.random.normal(jax.random.PRNGKey(1), (3, 5, 7, 11), dtype=jnp.float32)
    out2 = jax.block_until_ready(arelu(x2, alphap, betap))
    assert jnp.allclose(out2, arelu_reference(x2, alphap, betap), atol=1e-6, rtol=1e-6)

    print("KERNEL_OK")
</pallas_src>

<mosaic_0001>
module attributes {stable_mosaic.version = 11 : i64} {
  func.func @_arelu_kernel(%arg0: i32, %arg1: memref<1xf32, #tpu.memory_space<smem>>, %arg2: memref<1xf32, #tpu.memory_space<smem>>, %arg3: memref<2x1024xf32, #tpu.memory_space<vmem>>, %arg4: memref<2x1024xf32, #tpu.memory_space<vmem>>) attributes {dimension_semantics = [#tpu.dimension_semantics<parallel>], iteration_bounds = array<i64: 1>, scalar_prefetch = 0 : i64, scratch_operands = 0 : i64, tpu.core_type = #tpu.core_type<tc>, window_params = [{transform_indices = @transform_0, window_bounds = array<i64: 1>}, {transform_indices = @transform_1, window_bounds = array<i64: 1>}, {transform_indices = @transform_2, window_bounds = array<i64: 2, 1024>}, {transform_indices = @transform_3, window_bounds = array<i64: 2, 1024>}]} {
    %c0 = arith.constant 0 : index
    %0 = memref.load %arg1[%c0] : memref<1xf32, #tpu.memory_space<smem>>
    %c0_0 = arith.constant 0 : index
    %1 = memref.load %arg2[%c0_0] : memref<1xf32, #tpu.memory_space<smem>>
    %c0_1 = arith.constant 0 : index
    %c0_2 = arith.constant 0 : index
    %2 = vector.load %arg3[%c0_1, %c0_2] : memref<2x1024xf32, #tpu.memory_space<vmem>>, vector<2x1024xf32>
    %cst = arith.constant 0.000000e+00 : f32
    %3 = vector.broadcast %cst : f32 to vector<2x1024xf32>
    %4 = arith.cmpf ogt, %2, %3 : vector<2x1024xf32>
    %5 = vector.broadcast %1 : f32 to vector<2x1024xf32>
    %6 = vector.broadcast %0 : f32 to vector<2x1024xf32>
    %7 = arith.select %4, %5, %6 : vector<2x1024xi1>, vector<2x1024xf32>
    %8 = arith.mulf %2, %7 : vector<2x1024xf32>
    %c0_3 = arith.constant 0 : index
    %c0_4 = arith.constant 0 : index
    %9 = vector.load %arg4[%c0_3, %c0_4] : memref<2x1024xf32, #tpu.memory_space<vmem>>, vector<2x1024xf32>
    tpu.vector_store %arg4[%c0_3, %c0_4], %8 {strides = array<i32>} : memref<2x1024xf32, #tpu.memory_space<vmem>>, vector<2x1024xf32>,
    return
  }
  func.func @transform_0(%arg0: i32) -> i32 {
    %c0_i32 = arith.constant 0 : i32
    %c0_i32_0 = arith.constant 0 : i32
    return %c0_i32 : i32
  }
  func.func @transform_1(%arg0: i32) -> i32 {
    %c0_i32 = arith.constant 0 : i32
    %c0_i32_0 = arith.constant 0 : i32
    return %c0_i32 : i32
  }
  func.func @transform_2(%arg0: i32) -> (i32, i32) {
    %c0_i32 = arith.constant 0 : i32
    %c0_i32_0 = arith.constant 0 : i32
    return %arg0, %c0_i32 : i32, i32
  }
  func.func @transform_3(%arg0: i32) -> (i32, i32) {
    %c0_i32 = arith.constant 0 : i32
    %c0_i32_0 = arith.constant 0 : i32
    return %arg0, %c0_i32 : i32, i32
  }
}

</mosaic_0001>

<bundles_post_ra>
// kernel: tpu_custom_call.1
= control target key start
LH: loop header
LB: loop body
LE: loop exit
PB: predicated region body
PF: predicated region fallthrough
CT: control target
= control target key end

     0   :  { %10 = vsyncpa [#allocation5], 0  ;;  %s150_s0 = inlined_call_operand.<no memory space> [shape: f32[1], index: 0, kind: input, shape index: {}]   ;;  %s151_s1 = inlined_call_operand.<no memory space> [shape: f32[1], index: 1, kind: input, shape index: {}]   ;;  %s152_s2 = inlined_call_operand.hbm [shape: f32[2,1024], index: 2, kind: input, shape index: {}]   ;;  %s153_s3 = inlined_call_operand.hbm [shape: f32[2,1024], index: 3, kind: output, shape index: {}]  }
   0x1   :  { %11 = vsyncpa [#allocation6], 0  ;;  %s21_s14 = sshll.u32 %s152_s2, 4  ;;  %s116_s15 = smov [#allocation4]   ;;  %s22_s14 = int_to_ptr.hbm [resolvable:$true] %s21_s14 }
   0x2   :  { %s23_s16 = sshll.u32 %s116_s15, 4  ;;  %s24_s16 = int_to_ptr.vmem [resolvable:$true] %s23_s16 }
   0x3   :  { %26 = dma.hbm_to_vmem [thread:$0]  %s22_s14, 256, %s24_s16, [#allocation5]  }
   0x4   :  { %112 = dma.done.wait [#allocation5], 256  }
   0x5   :  { %113 = vsyncadd [#allocation5], 4294967040  ;;  %v37_v0 = vstv %s151_s1  ;;  %v38_v1 = vstv %s150_s0  ;;  %v33_v2 = vld [vmem:[#allocation4] sm:$0xff]  ;;  %v34_v3 = vld [vmem:[#allocation4 + $0x8] sm:$0xff]  ;;  %s117_s2 = smov [#allocation7]   ;;  %s52_s24 = sshll.u32 %s153_s3, 4  ;;  %s53_s24 = int_to_ptr.hbm [resolvable:$true] %s52_s24 }
   0x6   :  { %vm35_vm0 = vcmp.gt.f32.partialorder %v33_v2, 0.0  ;;  %vm36_vm1 = vcmp.gt.f32.partialorder %v34_v3, 0.0  ;;  %s50_s21 = sshll.u32 %s117_s2, 4  ;;  %s51_s21 = int_to_ptr.vmem [resolvable:$true] %s50_s21 }
   0x7   :  { %v39_v4 = vsel %vm35_vm0, %v37_v0, %v38_v1  ;;  %v40_v5 = vsel %vm36_vm1, %v37_v0, %v38_v1 }
   0x8   :  { %v41_v6 = vmul.f32 %v39_v4, %v33_v2  ;;  %v42_v7 = vmul.f32 %v40_v5, %v34_v3 }
   0xa   :  { %43 = vst [vmem:[#allocation7] sm:$0xff] %v41_v6 }
   0xb   :  { %44 = vst [vmem:[#allocation7 + $0x8] sm:$0xff] %v42_v7 }
   0xc   :  { %55 = dma.vmem_to_hbm [thread:$0]  %s51_s21, 256, %s53_s24, [#allocation6]  }
   0xd   :  { %114 = dma.done.wait [#allocation6], 256  }
   0xe   :  { %115 = vsyncadd [#allocation6], 4294967040 }
   0xf   :  { %60 = vsyncpa [#allocation5], 1 }
  0x10   :  { %61 = vsyncpa [#allocation6], 1 }

</bundles_post_ra>
